<compile_context>
chip_gen: v7x
topology: tpu7x:2x2x1
jax: 0.10.0
libtpu: 0.0.40
codegen_flags: <defaults>
</compile_context>

<pallas_src>
import math

import jax
import jax.numpy as jnp
import numpy as np
from jax import lax
from jax.experimental import pallas as pl
from jax.experimental.pallas import tpu as pltpu


# ------------------------------ Pallas kernel -------------------------------
def _conv_gemm_kernel(w_ref, a_ref, o_ref):
    # w_ref: (Cout, K) bf16   a_ref: (K, DHW) bf16   o_ref: (Cout, DHW) f32
    o_ref[...] = jnp.dot(
        w_ref[...], a_ref[...], preferred_element_type=jnp.float32
    ).astype(o_ref.dtype)


# --------------------------- conv3d via im2col GEMM --------------------------
def conv3d_pallas(x: jax.Array, weight: jax.Array) -> jax.Array:
    """x: (N, Cin, D, H, W) f32; weight: (Cout, Cin, KD, KH, KW) f32.
    stride=1, padding=0, dilation=1, groups=1, no bias (module config)."""
    N, Cin, D, H, W = x.shape
    Cout, Cin2, KD, KH, KW = weight.shape
    assert Cin == Cin2
    Do, Ho, Wo = D - KD + 1, H - KH + 1, W - KW + 1
    K = Cin * KD * KH * KW
    DHW = Do * Ho * Wo

    # Single fused patch extraction (im2col). Output: (N, K, Do, Ho, Wo) with
    # the K axis ordered (c, kd, kh, kw) -- identical to weight.reshape(Cout,K).
    patches = lax.conv_general_dilated_patches(
        x.astype(jnp.bfloat16),
        filter_shape=(KD, KH, KW),
        window_strides=(1, 1, 1),
        padding="VALID",
        dimension_numbers=("NCDHW", "OIDHW", "NCDHW"),
    )
    a = patches.reshape(N, K, DHW)                       # contiguous -> free
    w2d = weight.reshape(Cout, K).astype(jnp.bfloat16)   # (Cout, K), tiny

    cost = pl.CostEstimate(
        flops=2 * N * DHW * K * Cout,
        transcendentals=0,
        bytes_accessed=a.size * 2 + w2d.size * 2 + N * Cout * DHW * 4,
    )

    out = pl.pallas_call(
        _conv_gemm_kernel,
        out_shape=jax.ShapeDtypeStruct((N, Cout, DHW), jnp.float32),
        grid_spec=pltpu.PrefetchScalarGridSpec(
            num_scalar_prefetch=0,
            grid=(N,),
            in_specs=[
                # Weight matrix stays resident across all grid steps.
                pl.BlockSpec((Cout, K), lambda n: (0, 0)),
                # One batch element's patch matrix per step (leading dim squeezed).
                pl.BlockSpec((None, K, DHW), lambda n: (n, 0, 0)),
            ],
            out_specs=pl.BlockSpec((None, Cout, DHW), lambda n: (n, 0, 0)),
        ),
        compiler_params=pltpu.CompilerParams(
            dimension_semantics=("parallel",),   # shards over 2 TCs on v7x
        ),
        cost_estimate=cost,
    )(w2d, a)

    # Output is already in NCDHW element order: reshape only, no transpose.
    return out.reshape(N, Cout, Do, Ho, Wo)


# ----------------------------------- main ------------------------------------
if __name__ == "__main__":
    # Module config (asymmetric kernel, square spatial input).
    in_channels, out_channels = 3, 64
    kernel_size = (3, 5, 7)
    batch, spatial = 2, 12  # D = H = W = 12

    key = jax.random.PRNGKey(0)
    kx, kw = jax.random.split(key)

    x = jax.random.normal(
        kx, (batch, in_channels, spatial, spatial, spatial), dtype=jnp.float32
    )
    # Deterministic init mimicking nn.Conv3d: U(-1/sqrt(fan_in), 1/sqrt(fan_in))
    fan_in = in_channels * math.prod(kernel_size)
    bound = 1.0 / math.sqrt(fan_in)
    weight = jax.random.uniform(
        kw,
        (out_channels, in_channels) + kernel_size,
        minval=-bound,
        maxval=bound,
        dtype=jnp.float32,
    )

    y = jax.jit(conv3d_pallas)(x, weight)
    y = jax.block_until_ready(y)

    # Reference check against XLA's conv (f32, highest precision).
    y_ref = lax.conv_general_dilated(
        x,
        weight,
        window_strides=(1, 1, 1),
        padding="VALID",
        dimension_numbers=("NCDHW", "OIDHW", "NCDHW"),
        precision=lax.Precision.HIGHEST,
    )
    assert y.shape == y_ref.shape, (y.shape, y_ref.shape)
    np.testing.assert_allclose(np.asarray(y), np.asarray(y_ref), rtol=2e-2, atol=2e-2)

    print("KERNEL_OK")
</pallas_src>

<mosaic_0001>
module attributes {stable_mosaic.version = 11 : i64} {
  func.func @_conv_gemm_kernel(%arg0: i32, %arg1: memref<64x315xbf16, #tpu.memory_space<vmem>>, %arg2: memref<1x315x480xbf16, #tpu.memory_space<vmem>>, %arg3: memref<1x64x480xf32, #tpu.memory_space<vmem>>) attributes {dimension_semantics = [#tpu.dimension_semantics<parallel>], iteration_bounds = array<i64: 2>, scalar_prefetch = 0 : i64, scratch_operands = 0 : i64, tpu.core_type = #tpu.core_type<tc>, window_params = [{pipeline_mode = #tpu.pipeline_mode<synchronous>, transform_indices = @transform_0, window_bounds = array<i64: 64, 315>}, {transform_indices = @transform_1, window_bounds = array<i64: 1, 315, 480>}, {transform_indices = @transform_2, window_bounds = array<i64: 1, 64, 480>}]} {
    %c0 = arith.constant 0 : index
    %c0_0 = arith.constant 0 : index
    %0 = vector.load %arg1[%c0, %c0_0] : memref<64x315xbf16, #tpu.memory_space<vmem>>, vector<64x315xbf16>
    %c0_1 = arith.constant 0 : index
    %c0_2 = arith.constant 0 : index
    %c0_3 = arith.constant 0 : index
    %1 = vector.load %arg2[%c0_1, %c0_2, %c0_3] : memref<1x315x480xbf16, #tpu.memory_space<vmem>>, vector<1x315x480xbf16>
    %2 = vector.shape_cast %1 : vector<1x315x480xbf16> to vector<315x480xbf16>
    %cst = arith.constant dense<0.000000e+00> : vector<64x480xf32>
    %3 = tpu.matmul %0, %2, %cst {dimension_numbers = #tpu.dot_dimension_numbers<[1], [0], [0], [1], [0, 0, 1, 1], [], []>} : vector<64x315xbf16>, vector<315x480xbf16>, vector<64x480xf32> -> vector<64x480xf32>
    %c0_4 = arith.constant 0 : index
    %c0_5 = arith.constant 0 : index
    %c0_6 = arith.constant 0 : index
    %4 = vector.load %arg3[%c0_4, %c0_5, %c0_6] : memref<1x64x480xf32, #tpu.memory_space<vmem>>, vector<1x64x480xf32>
    %5 = vector.shape_cast %4 : vector<1x64x480xf32> to vector<64x480xf32>
    %6 = vector.shape_cast %3 : vector<64x480xf32> to vector<1x64x480xf32>
    tpu.vector_store %arg3[%c0_4, %c0_5, %c0_6], %6 {strides = array<i32>} : memref<1x64x480xf32, #tpu.memory_space<vmem>>, vector<1x64x480xf32>,
    return
  }
  func.func @transform_0(%arg0: i32) -> (i32, i32) {
    %c0_i32 = arith.constant 0 : i32
    %c0_i32_0 = arith.constant 0 : i32
    %c0_i32_1 = arith.constant 0 : i32
    return %c0_i32, %c0_i32_0 : i32, i32
  }
  func.func @transform_1(%arg0: i32) -> (i32, i32, i32) {
    %c0_i32 = arith.constant 0 : i32
    %c0_i32_0 = arith.constant 0 : i32
    %c0_i32_1 = arith.constant 0 : i32
    return %arg0, %c0_i32, %c0_i32_0 : i32, i32, i32
  }
  func.func @transform_2(%arg0: i32) -> (i32, i32, i32) {
    %c0_i32 = arith.constant 0 : i32
    %c0_i32_0 = arith.constant 0 : i32
    %c0_i32_1 = arith.constant 0 : i32
    return %arg0, %c0_i32, %c0_i32_0 : i32, i32, i32
  }
}

</mosaic_0001>

<bundles_post_ra>
// kernel: conv3d_pallas.1
= control target key start
LH: loop header
LB: loop body
LE: loop exit
PB: predicated region body
PF: predicated region fallthrough
CT: control target
= control target key end

     0   :  { %s1421_s9 = smov 0   ;;  %s1610_s0 = inlined_call_operand.vmem [shape: bf16[64,315], index: 0, kind: input, shape index: {}]   ;;  %s1611_s1 = inlined_call_operand.vmem [shape: bf16[2,315,480], index: 1, kind: input, shape index: {}]   ;;  %s1612_s2 = inlined_call_operand.vmem [shape: f32[2,64,480], index: 2, kind: output, shape index: {}]  }
   0x1 LB: > { %s1106_s10 = sadd.s32 4294967295, %s1402_s9   ;;  %p1110_p0 = scmp.ge.s32.totalorder %s1402_s9, 1  ;;  %s1402_s9 = sphi %s1421_s9, %s12_s9  }
   0x2   : > { %p112_p1 = scmp.lt.s32.totalorder %s1402_s9, 3 }
   0x4   : > { %p113_p2 = pnand %p1110_p0, %p112_p1 }
   0x5   : > { %p134_p3 = scmp.lt.s32.totalorder (!%p113_p2), %s1106_s10, 1  ;;  %v1358_v0 = vld [vmem:[%s1610_s0 + $0x4] ss:$12 sps:$4 sm:$0xff] (!%p113_p2)   ;;  %vm710_vm0 = vcmask (!%p113_p2), 1044480   ;;  %vm711_vm1 = vcmask (!%p113_p2), 1045504   ;;  %vm697_vm2 = vcmask (!%p113_p2), 482304  }
   0x6   : > { %116 = sbr.rel (%p113_p2) target bundleno = 354 (0x162), region = 28  ;;  %758 = vmatprep.mubr.bf16.mxu0 (!%p113_p2), %v1358_v0  ;;  %904 = vmatprep.mubr.bf16.mxu1 (!%p113_p2), %v1358_v0  ;;  %vm1021_vm3 = vcmask (!%p113_p2), 785408  }
   0xd   : > { %s1614_s10 = smov (!%p134_p3, %s1106_s10), 1 }
   0xe   : > { %s1249_s13 = smul.u32 640, %s1614_s10 }
  0x10   : > { %s1438_s16 = scalar_lea.vmem %s1611_s1, %s1249_s13  ;;  %s1216_s13 = sshll.u32 %s1614_s10, 8 }
  0x11   : > { %v1260_v1 = vld [vmem:[%s1438_s16 + $0x4] ss:$16 sps:$4 sm:$0xff]   ;;  %v1262_v2 = vld [vmem:[%s1438_s16 + $0xc] ss:$16 sps:$4 sm:$0xff]   ;;  %v1264_v3 = vld [vmem:[%s1438_s16] ss:$16 sps:$4 sm:$0xff]  }
  0x12   : > { %726 = vmatprep.subr.bf16.mxu0 %v1260_v1  ;;  %v1265_v4 = vld [vmem:[%s1438_s16 + $0x8] ss:$16 sps:$4 sm:$0xff]   ;;  %872 = vmatprep.subr.bf16.mxu1 %v1262_v2  ;;  %v1266_v5 = vld [vmem:[%s1438_s16 + $0x24] ss:$16 sps:$4 sm:$0xff]   ;;  %v1268_v6 = vld [vmem:[%s1438_s16 + $0x2c] ss:$16 sps:$4 sm:$0xff]  }
  0x13   : > { %727 = vmatpush1.bf16.msra.mxu0 %v1264_v3  ;;  %873 = vmatpush1.bf16.msra.mxu1 %v1265_v4  ;;  %v1270_v7 = vld [vmem:[%s1438_s16 + $0x20] ss:$16 sps:$4 sm:$0xff]   ;;  %v1271_v8 = vld [vmem:[%s1438_s16 + $0x28] ss:$16 sps:$4 sm:$0xff]   ;;  %v1272_v9 = vld [vmem:[%s1438_s16 + $0x44] ss:$16 sps:$4 sm:$0xff]  }
  0x14   : > { %728 = vmatprep.subr.bf16.mxu0 %v1266_v5  ;;  %874 = vmatprep.subr.bf16.mxu1 %v1268_v6  ;;  %v1274_v10 = vld [vmem:[%s1438_s16 + $0x4c] ss:$16 sps:$4 sm:$0xff]   ;;  %v1276_v11 = vld [vmem:[%s1438_s16 + $0x40] ss:$16 sps:$4 sm:$0xff]   ;;  %v1277_v12 = vld [vmem:[%s1438_s16 + $0x48] ss:$16 sps:$4 sm:$0xff]  }
  0x15   : > { %v1278_v13 = vld [vmem:[%s1438_s16 + $0x64] ss:$16 sps:$4 sm:$0xff]   ;;  %v1280_v14 = vld [vmem:[%s1438_s16 + $0x6c] ss:$16 sps:$4 sm:$0xff]   ;;  %v1282_v15 = vld [vmem:[%s1438_s16 + $0x60] ss:$16 sps:$4 sm:$0xff]  }
  0x16   : > { %v1283_v16 = vld [vmem:[%s1438_s16 + $0x68] ss:$16 sps:$4 sm:$0xff]   ;;  %v1284_v17 = vld [vmem:[%s1438_s16 + $0x84] ss:$16 sps:$4 sm:$0xff]   ;;  %v1286_v18 = vld [vmem:[%s1438_s16 + $0x8c] ss:$16 sps:$4 sm:$0xff]  }
  0x17   : > { %729 = vmatpush1.bf16.msra.mxu0 %v1270_v7  ;;  %875 = vmatpush1.bf16.msra.mxu1 %v1271_v8  ;;  %v1288_v19 = vld [vmem:[%s1438_s16 + $0x80] ss:$16 sps:$4 sm:$0xff]   ;;  %v1289_v20 = vld [vmem:[%s1438_s16 + $0x88] ss:$16 sps:$4 sm:$0xff]   ;;  %v1290_v21 = vld [vmem:[%s1438_s16 + $0xa4] ss:$16 sps:$4 sm:$0xff]  }
  0x18   : > { %730 = vmatprep.subr.bf16.mxu0 %v1272_v9  ;;  %876 = vmatprep.subr.bf16.mxu1 %v1274_v10  ;;  %v1292_v22 = vld [vmem:[%s1438_s16 + $0xac] ss:$16 sps:$4 sm:$0xff]   ;;  %v1294_v23 = vld [vmem:[%s1438_s16 + $0xa0] ss:$16 sps:$4 sm:$0xff]   ;;  %v1295_v24 = vld [vmem:[%s1438_s16 + $0xa8] ss:$16 sps:$4 sm:$0xff]  }
  0x19   : > { %v1296_v25 = vld [vmem:[%s1438_s16 + $0xc4] ss:$16 sps:$4 sm:$0xff]   ;;  %v1298_v26 = vld [vmem:[%s1438_s16 + $0xcc] ss:$16 sps:$4 sm:$0xff]   ;;  %v1300_v27 = vld [vmem:[%s1438_s16 + $0xc0] ss:$16 sps:$4 sm:$0xff]  }
  0x1a   : > { %v1301_v28 = vld [vmem:[%s1438_s16 + $0xc8] ss:$16 sps:$4 sm:$0xff]   ;;  %v1302_v29 = vld [vmem:[%s1438_s16 + $0xe4] ss:$16 sps:$4 sm:$0xff]   ;;  %v1304_v30 = vld [vmem:[%s1438_s16 + $0xec] ss:$16 sps:$4 sm:$0xff]  }
  0x1b   : > { %731 = vmatpush1.bf16.msra.mxu0 %v1276_v11  ;;  %877 = vmatpush1.bf16.msra.mxu1 %v1277_v12  ;;  %v1306_v31 = vld [vmem:[%s1438_s16 + $0xe0] ss:$16 sps:$4 sm:$0xff]   ;;  %v1307_v32 = vld [vmem:[%s1438_s16 + $0xe8] ss:$16 sps:$4 sm:$0xff]   ;;  %v1308_v33 = vld [vmem:[%s1438_s16 + $0x104] ss:$16 sps:$4 sm:$0xff]  }
  0x1c   : > { %732 = vmatprep.subr.bf16.mxu0 %v1278_v13  ;;  %878 = vmatprep.subr.bf16.mxu1 %v1280_v14  ;;  %v1310_v34 = vld [vmem:[%s1438_s16 + $0x10c] ss:$16 sps:$4 sm:$0xff]   ;;  %v1312_v35 = vld [vmem:[%s1438_s16 + $0x100] ss:$16 sps:$4 sm:$0xff]   ;;  %v1313_v36 = vld [vmem:[%s1438_s16 + $0x108] ss:$16 sps:$4 sm:$0xff]  }
  0x1d   : > { %v1314_v37 = vld [vmem:[%s1438_s16 + $0x124] ss:$16 sps:$4 sm:$0xff]   ;;  %v1316_v38 = vld [vmem:[%s1438_s16 + $0x12c] ss:$16 sps:$4 sm:$0xff]   ;;  %v1318_v39 = vld [vmem:[%s1438_s16 + $0x120] ss:$16 sps:$4 sm:$0xff]  }
  0x1e   : > { %v1319_v40 = vld [vmem:[%s1438_s16 + $0x128] ss:$16 sps:$4 sm:$0xff]   ;;  %v1320_v41 = vld [vmem:[%s1438_s16 + $0x144] ss:$16 sps:$4 sm:$0xff]   ;;  %v1322_v42 = vld [vmem:[%s1438_s16 + $0x14c] ss:$16 sps:$4 sm:$0xff]  }
  0x1f   : > { %733 = vmatpush1.bf16.msra.mxu0 %v1282_v15  ;;  %879 = vmatpush1.bf16.msra.mxu1 %v1283_v16  ;;  %v1324_v43 = vld [vmem:[%s1438_s16 + $0x140] ss:$16 sps:$4 sm:$0xff]   ;;  %v1325_v44 = vld [vmem:[%s1438_s16 + $0x148] ss:$16 sps:$4 sm:$0xff]   ;;  %v1326_v45 = vld [vmem:[%s1438_s16 + $0x164] ss:$16 sps:$4 sm:$0xff]  }
  0x20   : > { %734 = vmatprep.subr.bf16.mxu0 %v1284_v17  ;;  %880 = vmatprep.subr.bf16.mxu1 %v1286_v18  ;;  %v1328_v46 = vld [vmem:[%s1438_s16 + $0x16c] ss:$16 sps:$4 sm:$0xff]   ;;  %v1330_v47 = vld [vmem:[%s1438_s16 + $0x160] ss:$16 sps:$4 sm:$0xff]   ;;  %v1331_v48 = vld [vmem:[%s1438_s16 + $0x168] ss:$16 sps:$4 sm:$0xff]  }
  0x21   : > { %v1332_v49 = vld [vmem:[%s1438_s16 + $0x184] ss:$16 sps:$4 sm:$0xff]   ;;  %v1334_v50 = vld [vmem:[%s1438_s16 + $0x18c] ss:$16 sps:$4 sm:$0xff]   ;;  %v1336_v51 = vld [vmem:[%s1438_s16 + $0x180] ss:$16 sps:$4 sm:$0xff]  }
  0x22   : > { %v1337_v52 = vld [vmem:[%s1438_s16 + $0x188] ss:$16 sps:$4 sm:$0xff]   ;;  %v1338_v53 = vld [vmem:[%s1438_s16 + $0x1a4] ss:$16 sps:$4 sm:$0xff]   ;;  %v1340_v54 = vld [vmem:[%s1438_s16 + $0x1ac] ss:$16 sps:$4 sm:$0xff]  }
  0x23   : > { %735 = vmatpush1.bf16.msra.mxu0 %v1288_v19  ;;  %881 = vmatpush1.bf16.msra.mxu1 %v1289_v20  ;;  %v1342_v55 = vld [vmem:[%s1438_s16 + $0x1a0] ss:$16 sps:$4 sm:$0xff]   ;;  %v1343_v56 = vld [vmem:[%s1438_s16 + $0x1a8] ss:$16 sps:$4 sm:$0xff]   ;;  %v1344_v57 = vld [vmem:[%s1438_s16 + $0x1c4] ss:$16 sps:$4 sm:$0xff]  }
  0x24   : > { %736 = vmatprep.subr.bf16.mxu0 %v1290_v21  ;;  %882 = vmatprep.subr.bf16.mxu1 %v1292_v22  ;;  %v1346_v58 = vld [vmem:[%s1438_s16 + $0x1cc] ss:$16 sps:$4 sm:$0xff]   ;;  %v1348_v59 = vld [vmem:[%s1438_s16 + $0x1c0] ss:$16 sps:$4 sm:$0xff]   ;;  %v1349_v60 = vld [vmem:[%s1438_s16 + $0x1c8] ss:$16 sps:$4 sm:$0xff]  }
  0x25   : > { %v1350_v61 = vld [vmem:[%s1438_s16 + $0x1e4] ss:$16 sps:$4 sm:$0xff]   ;;  %v1352_v62 = vld [vmem:[%s1438_s16 + $0x1ec] ss:$16 sps:$4 sm:$0xff]   ;;  %v1354_v63 = vld [vmem:[%s1438_s16 + $0x1e0] ss:$16 sps:$4 sm:$0xff]  }
  0x26   : > { %v1355_v0 = vld [vmem:[%s1438_s16 + $0x1e8] ss:$16 sps:$4 sm:$0xff]   ;;  %v1361_v1 = vld [vmem:[%s1438_s16 + $0x204] ss:$16 sps:$4 sm:$0xff]   ;;  %v1364_v2 = vld [vmem:[%s1438_s16 + $0x20c] ss:$16 sps:$4 sm:$0xff]  }
  0x27   : > { %737 = vmatpush1.bf16.msra.mxu0 %v1294_v23  ;;  %883 = vmatpush1.bf16.msra.mxu1 %v1295_v24  ;;  %v1356_v3 = vld [vmem:[%s1610_s0] ss:$12 sps:$4 sm:$0xff]   ;;  %v1362_v5 = vld [vmem:[%s1438_s16 + $0x208] ss:$16 sps:$4 sm:$0xff]   ;;  %v1370_v7 = vld [vmem:[%s1438_s16 + $0x224] ss:$16 sps:$4 sm:$0xff]  }
  0x28   : > { %738 = vmatprep.subr.bf16.mxu0 %v1296_v25  ;;  %884 = vmatprep.subr.bf16.mxu1 %v1298_v26  ;;  %v1359_v4 = vld [vmem:[%s1438_s16 + $0x200] ss:$16 sps:$4 sm:$0xff]   ;;  %v1365_v6 = vld [vmem:[%s1610_s0 + $0x1c] ss:$12 sps:$4 sm:$0xff]   ;;  %v1404_v11 = vmov 65535  }
  0x29   : > { %v1373_v8 = vld [vmem:[%s1438_s16 + $0x22c] ss:$16 sps:$4 sm:$0xff]   ;;  %v1368_v9 = vld [vmem:[%s1438_s16 + $0x220] ss:$16 sps:$4 sm:$0xff]   ;;  %v1371_v10 = vld [vmem:[%s1438_s16 + $0x228] ss:$16 sps:$4 sm:$0xff]  }
  0x2a   : > { %v712_v12 = vsel %vm710_vm0, 4294967295, %v1404_v11  ;;  %v1379_v13 = vld [vmem:[%s1438_s16 + $0x244] ss:$16 sps:$4 sm:$0xff]   ;;  %v1382_v14 = vld [vmem:[%s1438_s16 + $0x24c] ss:$16 sps:$4 sm:$0xff]  }
  0x2b   : > { %739 = vmatpush1.bf16.msra.mxu0 %v1300_v27  ;;  %885 = vmatpush1.bf16.msra.mxu1 %v1301_v28  ;;  %v1388_v15 = vld [vmem:[%s1438_s16 + $0x264] ss:$16 sps:$4 sm:$0x3f]   ;;  %v1391_v16 = vld [vmem:[%s1438_s16 + $0x26c] ss:$16 sps:$4 sm:$0x3f]  }
  0x2c   : > { %740 = vmatprep.subr.bf16.mxu0 %v1302_v29  ;;  %886 = vmatprep.subr.bf16.mxu1 %v1304_v30  ;;  %v1367_v17 = vld [vmem:[%s1610_s0 + $0x18] ss:$12 sps:$4 sm:$0xff]   ;;  %v713_v18 = vsel %vm711_vm1, %v712_v12, 0  ;;  %v1374_v19 = vld [vmem:[%s1610_s0 + $0x34] ss:$12 sps:$4 sm:$0xff]  }
  0x2d   : > { %v1377_v20 = vld [vmem:[%s1438_s16 + $0x240] ss:$16 sps:$4 sm:$0xff]   ;;  %v1380_v21 = vld [vmem:[%s1438_s16 + $0x248] ss:$16 sps:$4 sm:$0xff]   ;;  %v718_v24 = vand.u32 %v1388_v15, %v713_v18  ;;  %v724_v25 = vand.u32 %v1391_v16, %v713_v18 }
  0x2e   : > { %v1386_v22 = vld [vmem:[%s1438_s16 + $0x260] ss:$16 sps:$4 sm:$0x3f]   ;;  %v1389_v23 = vld [vmem:[%s1438_s16 + $0x268] ss:$16 sps:$4 sm:$0x3f]   ;;  %s1565_s16 = scalar_lea.vmem %s1612_s2, %s1216_s13 }
  0x2f   : > { %741 = vmatpush1.bf16.msra.mxu0 %v1306_v31  ;;  %887 = vmatpush1.bf16.msra.mxu1 %v1307_v32  ;;  %v715_v26 = vand.u32 %v1386_v22, %v713_v18  ;;  %v721_v27 = vand.u32 %v1389_v23, %v713_v18  ;;  %v1376_v28 = vld [vmem:[%s1610_s0 + $0x30] ss:$12 sps:$4 sm:$0xff]   ;;  %v1383_v29 = vld [vmem:[%s1610_s0 + $0x4c] ss:$12 sps:$4 sm:$0xff]   ;;  %v1385_v30 = vld [vmem:[%s1610_s0 + $0x48] ss:$12 sps:$4 sm:$0xff]  }
  0x30   : > { %742 = vmatprep.subr.bf16.mxu0 %v1308_v33  ;;  %888 = vmatprep.subr.bf16.mxu1 %v1310_v34  ;;  %v1405_v31 = vmov 0   ;;  %v1392_v32 = vld [vmem:[%s1610_s0 + $0x8] ss:$12 sps:$4 sm:$0xff]   ;;  %v1393_v33 = vld [vmem:[%s1610_s0 + $0x20] ss:$12 sps:$4 sm:$0xff]  }
  0x31   : > { %v1394_v34 = vld [vmem:[%s1610_s0 + $0x38] ss:$12 sps:$4 sm:$0xff]  }
  0x33   : > { %743 = vmatpush1.bf16.msra.mxu0 %v1312_v35  ;;  %889 = vmatpush1.bf16.msra.mxu1 %v1313_v36  ;;  %v1395_v35 = vld [vmem:[%s1610_s0 + $0x50] ss:$12 sps:$4 sm:$0xff]  }
  0x34   : > { %744 = vmatprep.subr.bf16.mxu0 %v1314_v37  ;;  %890 = vmatprep.subr.bf16.mxu1 %v1316_v38 }
  0x37   : > { %745 = vmatpush1.bf16.msra.mxu0 %v1318_v39  ;;  %891 = vmatpush1.bf16.msra.mxu1 %v1319_v40 }
  0x38   : > { %746 = vmatprep.subr.bf16.mxu0 %v1320_v41  ;;  %892 = vmatprep.subr.bf16.mxu1 %v1322_v42 }
  0x3b   : > { %747 = vmatpush1.bf16.msra.mxu0 %v1324_v43  ;;  %893 = vmatpush1.bf16.msra.mxu1 %v1325_v44 }
  0x3c   : > { %748 = vmatprep.subr.bf16.mxu0 %v1326_v45  ;;  %894 = vmatprep.subr.bf16.mxu1 %v1328_v46 }
  0x3f   : > { %749 = vmatpush1.bf16.msra.mxu0 %v1330_v47  ;;  %895 = vmatpush1.bf16.msra.mxu1 %v1331_v48 }
  0x40   : > { %750 = vmatprep.subr.bf16.mxu0 %v1332_v49  ;;  %896 = vmatprep.subr.bf16.mxu1 %v1334_v50 }
  0x43   : > { %751 = vmatpush1.bf16.msra.mxu0 %v1336_v51  ;;  %897 = vmatpush1.bf16.msra.mxu1 %v1337_v52 }
  0x44   : > { %752 = vmatprep.subr.bf16.mxu0 %v1338_v53  ;;  %898 = vmatprep.subr.bf16.mxu1 %v1340_v54 }
  0x47   : > { %753 = vmatpush1.bf16.msra.mxu0 %v1342_v55  ;;  %899 = vmatpush1.bf16.msra.mxu1 %v1343_v56 }
  0x48   : > { %754 = vmatprep.subr.bf16.mxu0 %v1344_v57  ;;  %900 = vmatprep.subr.bf16.mxu1 %v1346_v58 }
  0x4b   : > { %755 = vmatpush1.bf16.msra.mxu0 %v1348_v59  ;;  %901 = vmatpush1.bf16.msra.mxu1 %v1349_v60 }
  0x4c   : > { %756 = vmatprep.subr.bf16.mxu0 %v1350_v61  ;;  %902 = vmatprep.subr.bf16.mxu1 %v1352_v62 }
  0x4f   : > { %757 = vmatpush1.bf16.msra.mxu0 %v1354_v63  ;;  %903 = vmatpush1.bf16.msra.mxu1 %v1355_v0 }
  0x50   : > { %799 = vmatprep.subr.bf16.mxu0 %v1361_v1  ;;  %945 = vmatprep.subr.bf16.mxu1 %v1364_v2 }
  0x52   : > { %759 = vmatmul.mubr.bf16.vlgmr.msra.gmra.mrb[0].mxu0 %v1356_v3  ;;  %905 = vmatmul.mubr.bf16.vlgmr.msra.gmra.mrb[0].mxu1 %v1356_v3 }
  0x53   : > { %800 = vmatpush1.bf16.msra.mxu0 %v1359_v4  ;;  %946 = vmatpush1.bf16.msra.mxu1 %v1362_v5 }
  0x54   : > { %768 = vmatprep.mubr.bf16.mxu0 %v1365_v6  ;;  %914 = vmatprep.mubr.bf16.mxu1 %v1365_v6 }
  0x55   : > { %801 = vmatprep.subr.bf16.mxu0 %v1370_v7  ;;  %947 = vmatprep.subr.bf16.mxu1 %v1373_v8 }
  0x57   : > { %802 = vmatpush1.bf16.msra.mxu0 %v1368_v9  ;;  %948 = vmatpush1.bf16.msra.mxu1 %v1371_v10 }
  0x58   : > { %803 = vmatprep.subr.bf16.mxu0 %v1379_v13  ;;  %949 = vmatprep.subr.bf16.mxu1 %v1382_v14 }
  0x5a   : > { %769 = vmatmul.mubr.bf16.gmra.mrb[4].mxu0 %v1367_v17  ;;  %915 = vmatmul.mubr.bf16.gmra.mrb[4].mxu1 %v1367_v17 }
  0x5b   : > { %778 = vmatprep.mubr.bf16.mxu0 %v1374_v19  ;;  %924 = vmatprep.mubr.bf16.mxu1 %v1374_v19 }
  0x5c   : > { %804 = vmatpush1.bf16.msra.mxu0 %v1377_v20  ;;  %950 = vmatpush1.bf16.msra.mxu1 %v1380_v21 }
  0x5d   : > { %805 = vmatprep.subr.bf16.mxu0 %v718_v24  ;;  %951 = vmatprep.subr.bf16.mxu1 %v724_v25 }
  0x60   : > { %806 = vmatpush1.bf16.msra.mxu0 %v715_v26  ;;  %952 = vmatpush1.bf16.msra.mxu1 %v721_v27 }
  0x62   : > { %779 = vmatmul.mubr.bf16.gmra.mrb[8].mxu0 %v1376_v28  ;;  %925 = vmatmul.mubr.bf16.gmra.mrb[8].mxu1 %v1376_v28 }
  0x63   : > { %788 = vmatprep.mubr.bf16.mxu0 %v1383_v29  ;;  %934 = vmatprep.mubr.bf16.mxu1 %v1383_v29 }
  0x6a   : > { %789 = vmatmul.mubr.bf16.gmra.mrb[12].mxu0 %v1385_v30  ;;  %935 = vmatmul.mubr.bf16.gmra.mrb[12].mxu1 %v1385_v30 }
  0x6b   : > { %831 = vmatprep.mubr.bf16.mxu0 %v1405_v31  ;;  %977 = vmatprep.mubr.bf16.mxu1 %v1405_v31 }
  0x72   : > { %1206 = vmatmul.mubr.msk.bf16.vlgmr.msra.gmra.mrb[0].mxu0 %vm697_vm2, %v1392_v32  ;;  %1210 = vmatmul.mubr.msk.bf16.vlgmr.msra.gmra.mrb[0].mxu1 %vm697_vm2, %v1392_v32 }
  0x73   : > { %841 = vmatprep.mubr.bf16.mxu0 %v1405_v31  ;;  %987 = vmatprep.mubr.bf16.mxu1 %v1405_v31 }
  0x7a   : > { %1207 = vmatmul.mubr.msk.bf16.gmra.mrb[4].mxu0 %vm697_vm2, %v1393_v33  ;;  %1211 = vmatmul.mubr.msk.bf16.gmra.mrb[4].mxu1 %vm697_vm2, %v1393_v33 }
  0x7b   : > { %851 = vmatprep.mubr.bf16.mxu0 %v1405_v31  ;;  %997 = vmatprep.mubr.bf16.mxu1 %v1405_v31 }
  0x82   : > { %1208 = vmatmul.mubr.msk.bf16.gmra.mrb[8].mxu0 %vm697_vm2, %v1394_v34  ;;  %1212 = vmatmul.mubr.msk.bf16.gmra.mrb[8].mxu1 %vm697_vm2, %v1394_v34 }
  0x83   : > { %861 = vmatprep.mubr.bf16.mxu0 %v1405_v31  ;;  %1007 = vmatprep.mubr.bf16.mxu1 %v1405_v31 }
  0x8a   : > { %1209 = vmatmul.mubr.msk.bf16.gmra.mrb[12].mxu0 %vm697_vm2, %v1395_v35  ;;  %1213 = vmatmul.mubr.msk.bf16.gmra.mrb[12].mxu1 %vm697_vm2, %v1395_v35 }
 0x145   : > { %v833_v36 = vpop.f32.mrb[0].mxu0  ;;  %v979_v37 = vpop.f32.mrb[0].mxu1 }
 0x146   : > { %1018 = vst [vmem:[%s1565_s16] sm:$0xff] %v833_v36  ;;  %1020 = vst [vmem:[%s1565_s16 + $0x10] sm:$0xff] %v979_v37  ;;  %v835_v38 = vpop.f32.mrb[1].mxu0  ;;  %v981_v39 = vpop.f32.mrb[1].mxu1 }
 0x147   : > { %1019 = vst [vmem:[%s1565_s16 + $0x8] sm:$0xff] %v835_v38  ;;  %1022 = vst.msk [vmem:[%s1565_s16 + $0x18] sm:$0xff] %vm1021_vm3, %v981_v39  ;;  %v837_v40 = vpop.f32.mrb[2].mxu0  ;;  %v983_v41 = vpop.f32.mrb[2].mxu1 }
 0x148   : > { %1023 = vst [vmem:[%s1565_s16 + $0x20] sm:$0xff] %v837_v40  ;;  %1025 = vst [vmem:[%s1565_s16 + $0x30] sm:$0xff] %v983_v41  ;;  %v839_v42 = vpop.f32.mrb[3].mxu0  ;;  %v985_v43 = vpop.f32.mrb[3].mxu1 }
 0x149   : > { %1024 = vst [vmem:[%s1565_s16 + $0x28] sm:$0xff] %v839_v42  ;;  %1026 = vst.msk [vmem:[%s1565_s16 + $0x38] sm:$0xff] %vm1021_vm3, %v985_v43 }
 0x14d   : > { %v843_v44 = vpop.f32.mrb[4].mxu0  ;;  %v989_v45 = vpop.f32.mrb[4].mxu1 }
 0x14e   : > { %1027 = vst [vmem:[%s1565_s16 + $0x40] sm:$0xff] %v843_v44  ;;  %1029 = vst [vmem:[%s1565_s16 + $0x50] sm:$0xff] %v989_v45  ;;  %v845_v46 = vpop.f32.mrb[5].mxu0  ;;  %v991_v47 = vpop.f32.mrb[5].mxu1 }
 0x14f   : > { %1028 = vst [vmem:[%s1565_s16 + $0x48] sm:$0xff] %v845_v46  ;;  %1030 = vst.msk [vmem:[%s1565_s16 + $0x58] sm:$0xff] %vm1021_vm3, %v991_v47  ;;  %v847_v48 = vpop.f32.mrb[6].mxu0  ;;  %v993_v49 = vpop.f32.mrb[6].mxu1 }
 0x150   : > { %1031 = vst [vmem:[%s1565_s16 + $0x60] sm:$0xff] %v847_v48  ;;  %1033 = vst [vmem:[%s1565_s16 + $0x70] sm:$0xff] %v993_v49  ;;  %v849_v50 = vpop.f32.mrb[7].mxu0  ;;  %v995_v51 = vpop.f32.mrb[7].mxu1 }
 0x151   : > { %1032 = vst [vmem:[%s1565_s16 + $0x68] sm:$0xff] %v849_v50  ;;  %1034 = vst.msk [vmem:[%s1565_s16 + $0x78] sm:$0xff] %vm1021_vm3, %v995_v51 }
 0x155   : > { %v853_v52 = vpop.f32.mrb[8].mxu0  ;;  %v999_v53 = vpop.f32.mrb[8].mxu1 }
 0x156   : > { %1035 = vst [vmem:[%s1565_s16 + $0x80] sm:$0xff] %v853_v52  ;;  %1037 = vst [vmem:[%s1565_s16 + $0x90] sm:$0xff] %v999_v53  ;;  %v855_v54 = vpop.f32.mrb[9].mxu0  ;;  %v1001_v55 = vpop.f32.mrb[9].mxu1 }
 0x157   : > { %1036 = vst [vmem:[%s1565_s16 + $0x88] sm:$0xff] %v855_v54  ;;  %1038 = vst.msk [vmem:[%s1565_s16 + $0x98] sm:$0xff] %vm1021_vm3, %v1001_v55  ;;  %v857_v56 = vpop.f32.mrb[10].mxu0  ;;  %v1003_v57 = vpop.f32.mrb[10].mxu1 }
 0x158   : > { %1039 = vst [vmem:[%s1565_s16 + $0xa0] sm:$0xff] %v857_v56  ;;  %1041 = vst [vmem:[%s1565_s16 + $0xb0] sm:$0xff] %v1003_v57  ;;  %v859_v58 = vpop.f32.mrb[11].mxu0  ;;  %v1005_v59 = vpop.f32.mrb[11].mxu1 }
 0x159   : > { %1040 = vst [vmem:[%s1565_s16 + $0xa8] sm:$0xff] %v859_v58  ;;  %1042 = vst.msk [vmem:[%s1565_s16 + $0xb8] sm:$0xff] %vm1021_vm3, %v1005_v59 }
 0x15d   : > { %v863_v60 = vpop.f32.mrb[12].mxu0  ;;  %v1009_v61 = vpop.f32.mrb[12].mxu1 }
 0x15e   : > { %1043 = vst [vmem:[%s1565_s16 + $0xc0] sm:$0xff] %v863_v60  ;;  %1045 = vst [vmem:[%s1565_s16 + $0xd0] sm:$0xff] %v1009_v61  ;;  %v865_v62 = vpop.f32.mrb[13].mxu0  ;;  %v1011_v63 = vpop.f32.mrb[13].mxu1 }
 0x15f   : > { %1044 = vst [vmem:[%s1565_s16 + $0xc8] sm:$0xff] %v865_v62  ;;  %1046 = vst.msk [vmem:[%s1565_s16 + $0xd8] sm:$0xff] %vm1021_vm3, %v1011_v63  ;;  %v867_v0 = vpop.f32.mrb[14].mxu0  ;;  %v1013_v1 = vpop.f32.mrb[14].mxu1 }
 0x160   : > { %1047 = vst [vmem:[%s1565_s16 + $0xe0] sm:$0xff] %v867_v0  ;;  %1049 = vst [vmem:[%s1565_s16 + $0xf0] sm:$0xff] %v1013_v1  ;;  %v869_v2 = vpop.f32.mrb[15].mxu0  ;;  %v1015_v3 = vpop.f32.mrb[15].mxu1 }
 0x161   : > { %1048 = vst [vmem:[%s1565_s16 + $0xe8] sm:$0xff] %v869_v2  ;;  %1050 = vst.msk [vmem:[%s1565_s16 + $0xf8] sm:$0xff] %vm1021_vm3, %v1015_v3 }
 0x162 PF: > { %s12_s9 = sadd.s32 1, %s1402_s9  }
 0x163   : > { %p9_p4 = scmp.ge.s32.totalorder %s12_s9, 4  }
 0x165   :  { %11 = sbr.rel (!%p9_p4) target bundleno = 1 (0x1), region = 58 }

</bundles_post_ra>
